<compile_context>
chip_gen: v6e
topology: v6e:2x2x1
jax: 0.10.0
libtpu: 0.0.40
codegen_flags: <defaults>
</compile_context>

<pallas_src>
import functools
import math

import jax
import jax.numpy as jnp
from jax import lax
from jax.experimental import pallas as pl
from jax.experimental.pallas import tpu as pltpu

_LANE = 128
_PAIR_TILE = 2 * 8 * _LANE   # keeps rows a multiple of 16 (even + sublane-aligned)
_BLOCK_ROWS = 2048           # 2048 x 128 f32 = 1 MiB per block


def _box_muller(b1, b2, scale, bitcast_f32):
    """Two uint32 bit arrays -> two independent N(0, scale^2) f32 arrays."""
    one = jnp.uint32(0x3F800000)
    # Mantissa trick: value in [1, 2), subtract 1 -> uniform in [0, 1).
    u1 = bitcast_f32((b1 >> jnp.uint32(9)) | one) - 1.0
    u2 = bitcast_f32((b2 >> jnp.uint32(9)) | one) - 1.0
    u1 = 1.0 - u1                                    # (0, 1] so log() is finite
    r = jnp.float32(scale) * jnp.sqrt(-2.0 * jnp.log(u1))   # std folded into r
    theta = jnp.float32(2.0 * math.pi) * u2
    return r * jnp.cos(theta), r * jnp.sin(theta)


# ---------------------------------------------------------------------------
# TPU path: on-chip hardware PRNG.
# ---------------------------------------------------------------------------
def _random_u32(shape):
    b = pltpu.prng_random_bits(shape)
    if b.dtype != jnp.uint32:
        b = pltpu.bitcast(b, jnp.uint32)
    return b


def _noise_kernel_tpu(seed_ref, x_ref, o_ref, *, std):
    # Mix the grid step into the seed so every tile draws independent noise.
    pltpu.prng_seed(seed_ref[0], pl.program_id(0))

    br, lanes = x_ref.shape
    half = br // 2

    # One draw per output element: half the block gives u1, half gives u2,
    # and both Box-Muller branches (cos and sin) are kept.
    b1 = _random_u32((half, lanes))
    b2 = _random_u32((half, lanes))
    z1, z2 = _box_muller(b1, b2, std, lambda v: pltpu.bitcast(v, jnp.float32))

    # Full 128-lane stores; static slices on the refs are free.
    o_ref[:half, :] = (x_ref[:half, :].astype(jnp.float32) + z1).astype(o_ref.dtype)
    o_ref[half:, :] = (x_ref[half:, :].astype(jnp.float32) + z2).astype(o_ref.dtype)


# ---------------------------------------------------------------------------
# Non-TPU (CPU / interpret) fallback: same Box-Muller math, but the raw bits
# are drawn with jax.random in the wrapper (pltpu.prng_* has no CPU lowering).
# ---------------------------------------------------------------------------
def _noise_kernel_bits(x_ref, b1_ref, b2_ref, o_ref, *, std):
    half = b1_ref.shape[0]
    z1, z2 = _box_muller(
        b1_ref[...], b2_ref[...], std,
        lambda v: lax.bitcast_convert_type(v, jnp.float32))
    o_ref[:half, :] = (x_ref[:half, :].astype(jnp.float32) + z1).astype(o_ref.dtype)
    o_ref[half:, :] = (x_ref[half:, :].astype(jnp.float32) + z2).astype(o_ref.dtype)


def noise_forward(x, *, std, seed=0, training=True):
    """JAX/Pallas equivalent of Noise(std).forward(x)."""
    if not training:
        return x

    orig_shape = x.shape
    out_dtype = x.dtype

    n = x.size
    flat = x.reshape(-1)                      # layout-preserving, no cast
    rem = n % _PAIR_TILE
    needs_pad = rem != 0
    if needs_pad:
        # TODO(synk): rare ragged tail — could be handled with an in-kernel
        # masked store on the last grid step instead of a wrapper pad.
        flat = jnp.pad(flat, (0, _PAIR_TILE - rem))
    rows = flat.size // _LANE
    x2 = flat.reshape(rows, _LANE)

    br = min(_BLOCK_ROWS, rows)               # rows is a multiple of 16, so br is even
    grid = (pl.cdiv(rows, br),)
    out_shape = jax.ShapeDtypeStruct((rows, _LANE), out_dtype)

    if jax.default_backend() == "tpu":
        seed_arr = jnp.asarray([seed], dtype=jnp.int32)
        out2 = pl.pallas_call(
            functools.partial(_noise_kernel_tpu, std=float(std)),
            out_shape=out_shape,
            grid_spec=pltpu.PrefetchScalarGridSpec(
                num_scalar_prefetch=1,
                grid=grid,
                in_specs=[pl.BlockSpec((br, _LANE), lambda i, seed: (i, 0))],
                out_specs=pl.BlockSpec((br, _LANE), lambda i, seed: (i, 0)),
            ),
            compiler_params=pltpu.CompilerParams(
                dimension_semantics=("parallel",)),
        )(seed_arr, x2)
    else:
        k1, k2 = jax.random.split(jax.random.PRNGKey(seed))
        half_rows = rows // 2
        b1 = jax.random.bits(k1, (half_rows, _LANE), dtype=jnp.uint32)
        b2 = jax.random.bits(k2, (half_rows, _LANE), dtype=jnp.uint32)
        half_spec = pl.BlockSpec((br // 2, _LANE), lambda i: (i, 0))
        out2 = pl.pallas_call(
            functools.partial(_noise_kernel_bits, std=float(std)),
            out_shape=out_shape,
            grid=grid,
            in_specs=[pl.BlockSpec((br, _LANE), lambda i: (i, 0)),
                      half_spec, half_spec],
            out_specs=pl.BlockSpec((br, _LANE), lambda i: (i, 0)),
        )(x2, b1, b2)

    if needs_pad:
        out2 = out2.reshape(-1)[:n]
    return out2.reshape(orig_shape)


if __name__ == "__main__":
    key = jax.random.PRNGKey(0)
    x = jax.random.normal(key, (2, 4, 16, 16), dtype=jnp.float32)  # NCHW

    std = 0.1
    out = noise_forward(x, std=std, seed=0, training=True)
    out = jax.block_until_ready(out)

    assert out.shape == x.shape and out.dtype == x.dtype
    assert bool(jnp.all(jnp.isfinite(out)))

    diff = out - x
    assert float(jnp.max(jnp.abs(diff))) > 0.0          # noise was added
    d_std = float(jnp.std(diff))
    assert 0.03 < d_std < 0.3, d_std                     # ~N(0, 0.1^2)
    assert abs(float(jnp.mean(diff))) < 0.05             # ~zero-mean

    # Eval mode is identity.
    out_eval = noise_forward(x, std=std, seed=0, training=False)
    assert bool(jnp.all(out_eval == x))

    print("KERNEL_OK")
</pallas_src>

<mosaic_0001>
module attributes {stable_mosaic.version = 11 : i64} {
  func.func @_noise_kernel_bits(%arg0: i32, %arg1: memref<16x128xf32, #tpu.memory_space<vmem>>, %arg2: memref<8x128xi32, #tpu.memory_space<vmem>>, %arg3: memref<8x128xi32, #tpu.memory_space<vmem>>, %arg4: memref<16x128xf32, #tpu.memory_space<vmem>>) attributes {dimension_semantics = [#tpu.dimension_semantics<arbitrary>], iteration_bounds = array<i64: 1>, scalar_prefetch = 0 : i64, scratch_operands = 0 : i64, tpu.core_type = #tpu.core_type<tc>, window_params = [{transform_indices = @transform_0, window_bounds = array<i64: 16, 128>}, {transform_indices = @transform_1, window_bounds = array<i64: 8, 128>}, {transform_indices = @transform_2, window_bounds = array<i64: 8, 128>}, {transform_indices = @transform_3, window_bounds = array<i64: 16, 128>}]} {
    %c0 = arith.constant 0 : index
    %c0_0 = arith.constant 0 : index
    %0 = vector.load %arg2[%c0, %c0_0] : memref<8x128xi32, #tpu.memory_space<vmem>>, vector<8x128xi32>
    %c0_1 = arith.constant 0 : index
    %c0_2 = arith.constant 0 : index
    %1 = vector.load %arg3[%c0_1, %c0_2] : memref<8x128xi32, #tpu.memory_space<vmem>>, vector<8x128xi32>
    %c9_i32 = arith.constant 9 : i32
    %2 = vector.broadcast %c9_i32 : i32 to vector<8x128xi32>
    %3 = arith.shrui %0, %2 : vector<8x128xi32>
    %c1065353216_i32 = arith.constant 1065353216 : i32
    %4 = vector.broadcast %c1065353216_i32 : i32 to vector<8x128xi32>
    %5 = arith.ori %3, %4 : vector<8x128xi32>
    %6 = tpu.bitcast %5 : vector<8x128xi32> -> vector<8x128xf32>
    %cst = arith.constant 1.000000e+00 : f32
    %7 = vector.broadcast %cst : f32 to vector<8x128xf32>
    %8 = arith.subf %6, %7 : vector<8x128xf32>
    %c9_i32_3 = arith.constant 9 : i32
    %9 = vector.broadcast %c9_i32_3 : i32 to vector<8x128xi32>
    %10 = arith.shrui %1, %9 : vector<8x128xi32>
    %c1065353216_i32_4 = arith.constant 1065353216 : i32
    %11 = vector.broadcast %c1065353216_i32_4 : i32 to vector<8x128xi32>
    %12 = arith.ori %10, %11 : vector<8x128xi32>
    %13 = tpu.bitcast %12 : vector<8x128xi32> -> vector<8x128xf32>
    %cst_5 = arith.constant 1.000000e+00 : f32
    %14 = vector.broadcast %cst_5 : f32 to vector<8x128xf32>
    %15 = arith.subf %13, %14 : vector<8x128xf32>
    %cst_6 = arith.constant 1.000000e+00 : f32
    %16 = vector.broadcast %cst_6 : f32 to vector<8x128xf32>
    %17 = arith.subf %16, %8 : vector<8x128xf32>
    %18 = math.log %17 : vector<8x128xf32>
    %cst_7 = arith.constant -2.000000e+00 : f32
    %19 = vector.broadcast %cst_7 : f32 to vector<8x128xf32>
    %20 = arith.mulf %19, %18 : vector<8x128xf32>
    %21 = math.sqrt %20 : vector<8x128xf32>
    %cst_8 = arith.constant 1.000000e-01 : f32
    %22 = vector.broadcast %cst_8 : f32 to vector<8x128xf32>
    %23 = arith.mulf %22, %21 : vector<8x128xf32>
    %cst_9 = arith.constant 6.28318548 : f32
    %24 = vector.broadcast %cst_9 : f32 to vector<8x128xf32>
    %25 = arith.mulf %24, %15 : vector<8x128xf32>
    %26 = math.cos %25 : vector<8x128xf32>
    %27 = arith.mulf %23, %26 : vector<8x128xf32>
    %28 = math.sin %25 : vector<8x128xf32>
    %29 = arith.mulf %23, %28 : vector<8x128xf32>
    %c0_10 = arith.constant 0 : index
    %c0_11 = arith.constant 0 : index
    %30 = vector.load %arg1[%c0_10, %c0_11] : memref<16x128xf32, #tpu.memory_space<vmem>>, vector<8x128xf32>
    %31 = arith.addf %30, %27 : vector<8x128xf32>
    %c0_12 = arith.constant 0 : index
    %c0_13 = arith.constant 0 : index
    %32 = vector.load %arg4[%c0_12, %c0_13] : memref<16x128xf32, #tpu.memory_space<vmem>>, vector<8x128xf32>
    tpu.vector_store %arg4[%c0_12, %c0_13], %31 {strides = array<i32>} : memref<16x128xf32, #tpu.memory_space<vmem>>, vector<8x128xf32>,
    %c8 = arith.constant 8 : index
    %c0_14 = arith.constant 0 : index
    %33 = vector.load %arg1[%c8, %c0_14] : memref<16x128xf32, #tpu.memory_space<vmem>>, vector<8x128xf32>
    %34 = arith.addf %33, %29 : vector<8x128xf32>
    %c8_15 = arith.constant 8 : index
    %c0_16 = arith.constant 0 : index
    %35 = vector.load %arg4[%c8_15, %c0_16] : memref<16x128xf32, #tpu.memory_space<vmem>>, vector<8x128xf32>
    tpu.vector_store %arg4[%c8_15, %c0_16], %34 {strides = array<i32>} : memref<16x128xf32, #tpu.memory_space<vmem>>, vector<8x128xf32>,
    return
  }
  func.func @transform_0(%arg0: i32) -> (i32, i32) {
    %c0_i32 = arith.constant 0 : i32
    %c0_i32_0 = arith.constant 0 : i32
    return %arg0, %c0_i32 : i32, i32
  }
  func.func @transform_1(%arg0: i32) -> (i32, i32) {
    %c0_i32 = arith.constant 0 : i32
    %c0_i32_0 = arith.constant 0 : i32
    return %arg0, %c0_i32 : i32, i32
  }
  func.func @transform_2(%arg0: i32) -> (i32, i32) {
    %c0_i32 = arith.constant 0 : i32
    %c0_i32_0 = arith.constant 0 : i32
    return %arg0, %c0_i32 : i32, i32
  }
  func.func @transform_3(%arg0: i32) -> (i32, i32) {
    %c0_i32 = arith.constant 0 : i32
    %c0_i32_0 = arith.constant 0 : i32
    return %arg0, %c0_i32 : i32, i32
  }
}

</mosaic_0001>

<bundles_post_ra>
// kernel: tpu_custom_call.1
= control target key start
LH: loop header
LB: loop body
LE: loop exit
PB: predicated region body
PF: predicated region fallthrough
CT: control target
= control target key end

     0   :  { %8 = vsyncpa [#allocation3], 0  ;;  %s499_s0 = inlined_call_operand.hbm [shape: f32[16,128], index: 0, kind: input, shape index: {}]   ;;  %s500_s1 = inlined_call_operand.hbm [shape: u32[8,128], index: 1, kind: input, shape index: {}]   ;;  %s501_s2 = inlined_call_operand.hbm [shape: u32[8,128], index: 2, kind: input, shape index: {}]   ;;  %s502_s3 = inlined_call_operand.hbm [shape: f32[16,128], index: 3, kind: output, shape index: {}]  }
   0x1   :  { %9 = vsyncpa [#allocation6], 0 }
   0x2   :  { %10 = vsyncpa [#allocation4], 0  ;;  %s428_s12 = smov [#allocation5]   ;;  %s429_s14 = smov [#allocation2]  }
   0x3   :  { %s29_s13 = sshll.u32 %s428_s12, 4  ;;  %s16_s15 = sshll.u32 %s429_s14, 4  ;;  %s30_s13 = int_to_ptr.vmem [resolvable:$true] %s29_s13  ;;  %s17_s15 = int_to_ptr.vmem [resolvable:$true] %s16_s15 }
   0x4   :  { %s350_s16 = scalar_lea.vmem %s30_s13, 128  ;;  %p355_p1 = scmp.lt.s32.totalorder %s30_s13, %s30_s13 }
   0x5   :  { %p351_p0 = scmp.ne.s32.totalorder %s30_s13, %s350_s16  ;;  %p356_p2 = scmp.lt.s32.totalorder %s350_s16, %s350_s16 }
   0x7   :  { %p357_p3 = por %p356_p2, %p355_p1 }
   0x9   :  { %p358_p4 = pnand %p357_p3, %p351_p0 }
   0xb   :  { %361 = shalt.err (!%p358_p4)
}
   0xc   :  { %32 = dma.hbm_to_vmem [thread:$0]  %s500_s1, 128, %s30_s13, [#allocation6]  }
   0xd   :  { %s370_s19 = scalar_lea.vmem %s17_s15, 256  ;;  %p375_p6 = scmp.lt.s32.totalorder %s17_s15, %s17_s15 }
   0xe   :  { %p371_p5 = scmp.ne.s32.totalorder %s17_s15, %s370_s19  ;;  %p376_p7 = scmp.lt.s32.totalorder %s370_s19, %s370_s19 }
  0x10   :  { %p377_p8 = por %p376_p7, %p375_p6 }
  0x12   :  { %p378_p9 = pnand %p377_p8, %p371_p5 }
  0x14   :  { %381 = shalt.err (!%p378_p9)
}
  0x15   :  { %s430_s20 = smov 128   ;;  %s431_s21 = smov 8  }
  0x16   :  { %22 = dma.hbm_to_vmem [thread:$0]  %s499_s0, 256, %s17_s15, [#allocation3], %s430_s20, %s430_s20, %s431_s21  }
  0x17   :  { %s432_s24 = smov [#allocation7]  }
  0x18   :  { %s39_s25 = sshll.u32 %s432_s24, 4  ;;  %s40_s25 = int_to_ptr.vmem [resolvable:$true] %s39_s25 }
  0x19   :  { %s390_s1 = scalar_lea.vmem %s40_s25, 128  ;;  %p395_p11 = scmp.lt.s32.totalorder %s40_s25, %s40_s25 }
  0x1a   :  { %p391_p10 = scmp.ne.s32.totalorder %s40_s25, %s390_s1  ;;  %p396_p12 = scmp.lt.s32.totalorder %s390_s1, %s390_s1 }
  0x1c   :  { %p397_p13 = por %p396_p12, %p395_p11 }
  0x1e   :  { %p398_p0 = pnand %p397_p13, %p391_p10 }
  0x20   :  { %401 = shalt.err (!%p398_p0)
}
  0x21   :  { %42 = dma.hbm_to_vmem [thread:$0]  %s501_s2, 128, %s40_s25, [#allocation6]  }
  0x22   :  { %422 = dma.done.wait [#allocation3], 256  }
  0x23   :  { %423 = vsyncadd [#allocation3], 4294967040 }
  0x24   :  { %424 = dma.done.wait [#allocation6], 256  }
  0x25   :  { %425 = vsyncadd [#allocation6], 4294967040  ;;  %v53_v0 = vld [vmem:[#allocation7] sm:$0xff]  ;;  %v52_v13 = vld [vmem:[#allocation5] sm:$0xff]  ;;  %v433_v16 = vmov 683565275  }
  0x26   :  { %v58_v1 = vshrl.u32 %v53_v0, 9  ;;  %v434_v18 = vmov 2475754826   ;;  %v435_v20 = vmov 2131351028   ;;  %v54_v26 = vshrl.u32 %v52_v13, 9 }
  0x27   :  { %v436_v22 = vmov 2102212464   ;;  %v437_v24 = vmov 920167782   ;;  %v438_v33 = vmov 1326507024  }
  0x28   :  { %v59_v2 = vor.u32 1065353216, %v58_v1  ;;  %v55_v40 = vor.u32 1065353216, %v54_v26  ;;  %s439_s0 = smov [#allocation8]  }
  0x29   :  { %s295_s2 = sshll.u32 %s439_s0, 4  ;;  %s296_s2 = int_to_ptr.vmem [resolvable:$true] %s295_s2 }
  0x2a   :  { %v309_v3 = vadd.f32 -1.0, %v59_v2  ;;  %v308_v56 = vadd.f32 -1.0, %v55_v40  ;;  %s402_s28 = scalar_lea.vmem %s296_s2, 256  ;;  %p407_p2 = scmp.lt.s32.totalorder %s296_s2, %s296_s2 }
  0x2b   :  { %p403_p1 = scmp.ne.s32.totalorder %s296_s2, %s402_s28  ;;  %p408_p3 = scmp.lt.s32.totalorder %s402_s28, %s402_s28 }
  0x2c   :  { %v472_v4 = vmul.f32 6.2831855, %v309_v3  ;;  %v62_v61 = vsub.f32 1.0, %v308_v56 }
  0x2d   :  { %p409_p4 = por %p408_p3, %p407_p2 }
  0x2e   :  { %v78_v5 = vand.u32 2139095040, %v472_v4  ;;  %v75_v8 = vand.u32 2147483647, %v472_v4  ;;  %334 = vlog2.f32 %v62_v61  ;;  %vm77_vm7 = vcmp.lt.s32.totalorder %v472_v4, 0 }
  0x2f   :  { %p410_p5 = pnand %p409_p4, %p403_p1 }
  0x30   :  { %v79_v6 = vshrl.u32 %v78_v5, 23  ;;  %v82_v11 = vand.u32 8388607, %v75_v8  ;;  %vm76_vm8 = vcmp.le.f32.partialorder %v75_v8, 0.7853982 }
  0x32   :  { %v310_v7 = vadd.s32 4294967169, %v79_v6  ;;  %v83_v27 = vor.u32 8388608, %v82_v11 }
  0x34   :  { %v85_v9 = vadd.s32 1, %v310_v7  ;;  %v123_v41 = vshll.u32 %v83_v27, 8 }
  0x36   :  { %vm86_vm0 = vcmp.gt.s32.totalorder %v85_v9, 0 }
  0x37   :  { %v87_v10 = vsel %vm86_vm0, %v85_v9, 0 }
  0x38   :  { %v89_v12 = vand.u32 31, %v87_v10  ;;  %v88_v14 = vshrl.u32 %v87_v10, 5 }
  0x3a   :  { %v90_v15 = vsub.s32 32, %v89_v12  ;;  %v92_v17 = vshll.u32 %v433_v16, %v89_v12  ;;  %v95_v19 = vshll.u32 %v434_v18, %v89_v12  ;;  %v98_v21 = vshll.u32 %v435_v20, %v89_v12 }
  0x3b   :  { %v101_v23 = vshll.u32 %v436_v22, %v89_v12  ;;  %v104_v25 = vshll.u32 %v437_v24, %v89_v12  ;;  %vm107_vm1 = vcmp.lt.s32.totalorder %v88_v14, 1  ;;  %vm110_vm2 = vcmp.lt.s32.totalorder %v88_v14, 4  ;;  %v335_v9 = vpop.eup %334 }
  0x3c   :  { %v93_v28 = vshrl.u32 %v434_v18, %v90_v15  ;;  %v96_v29 = vshrl.u32 %v435_v20, %v90_v15  ;;  %v91_v30 = vshrl.u32 %v433_v16, %v90_v15  ;;  %v99_v31 = vshrl.u32 %v436_v22, %v90_v15 }
  0x3d   :  { %v102_v32 = vshrl.u32 %v437_v24, %v90_v15  ;;  %v105_v34 = vshrl.u32 %v438_v33, %v90_v15  ;;  %vm109_vm3 = vcmp.lt.s32.totalorder %v88_v14, 3  ;;  %vm108_vm4 = vcmp.lt.s32.totalorder %v88_v14, 2 }
  0x3e   :  { %v94_v35 = vor.u32 %v93_v28, %v92_v17  ;;  %v97_v36 = vor.u32 %v96_v29, %v95_v19  ;;  %v100_v37 = vor.u32 %v99_v31, %v98_v21  ;;  %v64_v11 = vmul.f32 0.6931472, %v335_v9 }
  0x3f   :  { %v103_v38 = vor.u32 %v102_v32, %v101_v23  ;;  %v106_v39 = vor.u32 %v105_v34, %v104_v25 }
  0x40   :  { %v111_v42 = vsel %vm107_vm1, %v91_v30, %v94_v35  ;;  %v112_v43 = vsel %vm110_vm2, %v100_v37, 2102212464  ;;  %v115_v44 = vsel %vm107_vm1, %v94_v35, %v97_v36  ;;  %v119_v48 = vsel %vm107_vm1, %v97_v36, %v100_v37 }
  0x41   :  { %v116_v45 = vsel %vm110_vm2, %v103_v38, 920167782  ;;  %v113_v46 = vsel %vm109_vm3, %v97_v36, %v112_v43  ;;  %v120_v49 = vsel %vm110_vm2, %v106_v39, 1326507024  ;;  %v65_v17 = vmul.f32 -2.0, %v64_v11 }
  0x42   :  { %v117_v47 = vsel %vm109_vm3, %v100_v37, %v116_v45  ;;  %v121_v51 = vsel %vm109_vm3, %v103_v38, %v120_v49  ;;  %v114_v52 = vsel %vm108_vm4, %v111_v42, %v113_v46  ;;  %vm167_vm1 = vweird.f32 %v472_v4 }
  0x43   :  { %v118_v50 = vsel %vm108_vm4, %v115_v44, %v117_v47  ;;  %v122_v53 = vsel %vm108_vm4, %v119_v48, %v121_v51  ;;  %v130_v59 = vmul.u32 %v123_v41, %v114_v52  ;;  %336 = vrsqrt.f32 %v65_v17  ;;  %v284_v51 = vld [vmem:[#allocation2] sm:$0xff] }
  0x44   :  { %v478_v54 = vmul.u32.u64.low %v123_v41, %v118_v50  ;;  %v479_v55 = vmul.u32.u64.high %v123_v41, %v118_v50, %v478_v54  ;;  %v481_v57 = vmul.u32.u64.low %v123_v41, %v122_v53  ;;  %v482_v58 = vmul.u32.u64.high %v123_v41, %v122_v53, %v481_v57  ;;  %v287_v53 = vld [vmem:[#allocation2 + $0x8] sm:$0xff] }
  0x45   :  { %vm68_vm9 = vcmp.eq.f32.partialorder %v65_v17, inf  ;;  %v71_v35 = vand.u32 2147483648, %v65_v17  ;;  %vm70_vm10 = vcmp.eq.f32.partialorder %v65_v17, 0.0 }
  0x46   :  { %v133_v60 = vadd.s32 1, %v479_v55  ;;  %vm132_vm5 = vc.u32 %v482_v58, %v478_v54  ;;  %v131_v12 = vadd.s32 %v478_v54, %v482_v58 }
  0x48   :  { %v134_v62 = vsel %vm132_vm5, %v133_v60, %v479_v55 }
  0x49   :  { %v135_v63 = vadd.s32 %v134_v62, %v130_v59 }
  0x4b   :  { %v136_v0 = vadd.s32 536870912, %v135_v63 }
  0x4d   :  { %v137_v1 = vshrl.u32 %v136_v0, 30 }
  0x4f   :  { %v138_v2 = vshll.u32 %v137_v1, 30  ;;  %v161_v26 = vsub.s32 4, %v137_v1 }
  0x50   :  { %v337_v32 = vpop.eup %336 }
  0x51   :  { %v139_v3 = vsub.s32 %v135_v63, %v138_v2  ;;  %v162_v29 = vsel %vm77_vm7, %v161_v26, %v137_v1  ;;  %v67_v34 = vmul.f32 %v337_v32, %v65_v17 }
  0x52   :  { %v164_v31 = vsel %vm76_vm8, 0, %v162_v29 }
  0x53   :  { %v141_v5 = vsub.s32 0, %v139_v3  ;;  %v272_v33 = vadd.s32 3, %v164_v31  ;;  %v168_v36 = vand.u32 3, %v164_v31  ;;  %v69_v38 = vsel %vm68_vm9, %v65_v17, %v67_v34 }
  0x54   :  { %v72_v40 = vsel %vm70_vm10, %v71_v35, %v69_v38 }
  0x55   :  { %v311_v6 = vmin.u32 %v141_v5, %v139_v3  ;;  %v273_v37 = vand.u32 3, %v272_v33  ;;  %vm173_vm11 = vcmp.eq.s32.totalorder %v168_v36, 2  ;;  %vm170_vm13 = vcmp.eq.s32.totalorder %v168_v36, 0 }
  0x56   :  { %vm169_vm15 = vcmp.lt.s32.totalorder %v168_v36, 2  ;;  %v73_v43 = vmul.f32 0.1, %v72_v40 }
  0x57   :  { %v143_v7 = vclz %v311_v6  ;;  %vm278_vm12 = vcmp.eq.s32.totalorder %v273_v37, 2  ;;  %vm275_vm14 = vcmp.eq.s32.totalorder %v273_v37, 0  ;;  %vm274_vm0 = vcmp.lt.s32.totalorder %v273_v37, 2 }
  0x59   :  { %v312_v10 = vadd.s32 4294967294, %v143_v7 }
  0x5b   :  { %vm313_vm6 = vcmp.lt.s32.totalorder %v312_v10, 0 }
  0x5c   :  { %v146_v13 = vsel %vm313_vm6, 0, %v312_v10 }
  0x5d   :  { %v147_v14 = vsub.s32 32, %v146_v13  ;;  %v148_v15 = vshll.u32 %v139_v3, %v146_v13  ;;  %v151_v16 = vsub.s32 4294967266, %v146_v13 }
  0x5f   :  { %v149_v18 = vshrl.u32 %v131_v12, %v147_v14  ;;  %v152_v19 = vadd.s32 127, %v151_v16 }
  0x61   :  { %v150_v20 = vor.u32 %v149_v18, %v148_v15  ;;  %v153_v21 = vshll.u32 %v152_v19, 23 }
  0x63   :  { %v154_v22 = vor.u32 4788187, %v153_v21  ;;  %v157_v23 = vcvt.s32.f32 %v150_v20 }
  0x65   :  { %v155_v24 = vand.u32 2147483647, %v154_v22 }
  0x67   :  { %v158_v25 = vmul.f32 %v157_v23, %v155_v24 }
  0x69   :  { %v159_v27 = vxor.u32 2147483648, %v158_v25 }
  0x6b   :  { %v160_v28 = vsel %vm77_vm7, %v159_v27, %v158_v25 }
  0x6c   :  { %v163_v30 = vsel %vm76_vm8, %v472_v4, %v160_v28 }
  0x6d   :  { %338 = vcosq.f32 %v163_v30 }
  0x6e   :  { %340 = vsinq.f32 %v163_v30 }
  0x7a   :  { %v339_v39 = vpop.eup %338 }
  0x7b   :  { %v341_v8 = vpop.eup %340  ;;  %v174_v41 = vxor.u32 2147483648, %v339_v39 }
  0x7c   :  { %v171_v42 = vxor.u32 2147483648, %v341_v8 }
  0x7d   :  { %v175_v44 = vsel %vm173_vm11, %v174_v41, %v341_v8  ;;  %v280_v45 = vsel %vm278_vm12, %v174_v41, %v341_v8 }
  0x7e   :  { %v172_v46 = vsel %vm170_vm13, %v339_v39, %v171_v42  ;;  %v277_v47 = vsel %vm275_vm14, %v339_v39, %v171_v42 }
  0x7f   :  { %v176_v48 = vsel %vm169_vm15, %v172_v46, %v175_v44  ;;  %v281_v49 = vsel %vm274_vm0, %v277_v47, %v280_v45 }
  0x80   :  { %v177_v50 = vsel %vm167_vm1, nan, %v176_v48  ;;  %v282_v52 = vsel %vm167_vm1, nan, %v281_v49 }
  0x81   :  { %v178_v54 = vmul.f32 %v177_v50, %v73_v43  ;;  %v283_v55 = vmul.f32 %v282_v52, %v73_v43 }
  0x83   :  { %v285_v56 = vadd.f32 %v284_v51, %v178_v54  ;;  %v288_v57 = vadd.f32 %v287_v53, %v283_v55 }
  0x85   :  { %286 = vst [vmem:[#allocation8] sm:$0xff] %v285_v56  ;;  %289 = vst [vmem:[#allocation8 + $0x8] sm:$0xff] %v288_v57 }
  0x86   :  { %413 = shalt.err (!%p410_p5)
}
  0x87   :  { %301 = dma.vmem_to_hbm [thread:$0]  %s296_s2, 256, %s502_s3, [#allocation4], %s430_s20, %s430_s20, %s431_s21  }
  0x88   :  { %426 = dma.done.wait [#allocation4], 256  }
  0x89   :  { %427 = vsyncadd [#allocation4], 4294967040 }
  0x8a   :  { %305 = vsyncpa [#allocation3], 1 }
  0x8b   :  { %306 = vsyncpa [#allocation6], 1 }
  0x8c   :  { %307 = vsyncpa [#allocation4], 1 }

</bundles_post_ra>
